<compile_context>
chip_gen: v6e
topology: v6e:2x2x1
jax: 0.10.0
libtpu: 0.0.40
codegen_flags: <defaults>
</compile_context>

<pallas_src>
import math

import jax
import jax.numpy as jnp
import numpy as np
from jax.experimental import pallas as pl
from jax.experimental.pallas import tpu as pltpu


_SMALL_INPUT_BYTES = 256 * 1024  # below this, XLA slice beats a kernel launch


def to_list(x, length):
    """padertorch-style to_list: broadcast scalars, pass lists through."""
    if isinstance(x, (list, tuple)):
        assert len(x) == length, (x, length)
        return list(x)
    return [x] * length


def _compute_trims(side, size, n_spatial):
    """Reproduce Trim.forward's side/size -> (front, end) trim computation."""
    sides = to_list(side, n_spatial)
    sizes = to_list(size, n_spatial)
    trims = []
    for sd, sz in zip(sides, sizes):
        if sd is None or sz < 1:
            # TODO(synk): like the original module, side=None with size != 0
            # is silently ignored.
            trims.append((0, 0))
        elif sd == 'front':
            trims.append((sz, 0))
        elif sd == 'both':
            trims.append((sz // 2, math.ceil(sz / 2)))
        elif sd == 'end':
            trims.append((0, sz))
        else:
            raise ValueError(f'trim side {sd} unknown')
    return trims


def _xla_trim(x, trims):
    """Plain XLA slice (used for tiny inputs and VMEM-oversized rows)."""
    slc = (slice(None), slice(None)) + tuple(
        slice(f, x.shape[2 + i] - e) for i, (f, e) in enumerate(trims))
    return x[slc]


def _vmem_capacity_bytes():
    try:
        cap = int(pltpu.get_tpu_info().vmem_capacity_bytes)
    except Exception:
        cap = 64 << 20
    # clamp to known per-TC capacities (64 MiB v7x ... 128 MiB v5e/v6e)
    return max(64 << 20, min(cap, 128 << 20))


def trim_forward(x, size, side='both', *, force_pallas=False, block_bytes=None):
    """Pallas-backed equivalent of Trim(side=side)(x, size)."""
    n_spatial = x.ndim - 2
    assert n_spatial >= 1, 'expected at least one spatial dim (N, C, spatial...)'
    trims = _compute_trims(side, size, n_spatial)

    # Identity short-circuit: no HBM round trip for a no-op trim.
    if all(t == (0, 0) for t in trims):
        return x

    N, C = x.shape[0], x.shape[1]
    in_spatial = list(x.shape[2:])
    out_spatial_true = tuple(s - f - e for s, (f, e) in zip(in_spatial, trims))
    assert all(o >= 1 for o in out_spatial_true), (
        'trim size must leave at least one element per spatial dim',
        in_spatial, trims)

    itemsize = np.dtype(x.dtype).itemsize
    total_bytes = int(np.prod(x.shape)) * itemsize
    if not force_pallas and total_bytes < _SMALL_INPUT_BYTES:
        return _xla_trim(x, trims)

    # ---------------- fold to the (R, inner...) work layout ----------------
    spatial = list(in_spatial)
    tr = [tuple(t) for t in trims]
    # Trailing fold: merge untrimmed trailing dims into the previous dim
    # (pure reshape; trim offsets scale by the folded width -> lane-dense out).
    while len(spatial) > 1 and tr[-1] == (0, 0):
        w = spatial.pop()
        tr.pop()
        f, e = tr[-1]
        tr[-1] = (f * w, e * w)
        spatial[-1] = spatial[-1] * w
    # Leading fold: untrimmed leading spatial dims join the N*C row axis.
    R = N * C
    while len(spatial) > 1 and tr[0] == (0, 0):
        R *= spatial.pop(0)
        tr.pop(0)

    out_inner = tuple(s - f - e for s, (f, e) in zip(spatial, tr))
    x_work = x.reshape((R,) + tuple(spatial))

    m = len(spatial)
    row_in_bytes = int(np.prod(spatial)) * itemsize
    row_out_bytes = int(np.prod(out_inner)) * itemsize

    # ---------------- per-generation block / VMEM sizing ----------------
    vmem_cap = _vmem_capacity_bytes()
    vmem_budget = vmem_cap - (16 << 20)              # headroom for Mosaic scratch
    if block_bytes is None:
        block_bytes = (10 << 20) if vmem_cap >= (96 << 20) else (6 << 20)

    bR = max(1, int(block_bytes // max(1, row_in_bytes)))
    if m == 1 and bR < R:
        # row axis is the sublane dim of the block when m == 1
        bR = max(8, (bR // 8) * 8)
    bR = min(bR, R)

    blk_bytes = bR * (row_in_bytes + row_out_bytes)
    need = 2 * blk_bytes + (2 << 20)                 # double-buffered in+out
    if need > vmem_budget:
        # TODO(synk): a single inner row exceeds the VMEM budget; inner-dim
        # tiling would interact with the trim offsets — defer to XLA's slice.
        return _xla_trim(x, trims)

    in_block = (bR,) + tuple(spatial)
    out_block = (bR,) + tuple(out_inner)
    # Static interior slice inside the input block (rows pass through whole).
    src_idx = (slice(None),) + tuple(
        slice(f, f + o) for (f, _), o in zip(tr, out_inner))

    def trim_kernel(x_ref, o_ref):
        # One static interior load, one full aligned store of the output block.
        o_ref[...] = x_ref[src_idx]

    zero = (0,) * m
    grid = (pl.cdiv(R, bR),)
    vmem_limit = int(min(max(32 << 20, need), vmem_budget))

    in_bytes = int(np.prod(x_work.shape)) * itemsize
    out_bytes = R * row_out_bytes

    out = pl.pallas_call(
        trim_kernel,
        out_shape=jax.ShapeDtypeStruct((R,) + out_inner, x.dtype),
        grid_spec=pl.GridSpec(
            grid=grid,
            in_specs=[pl.BlockSpec(in_block, lambda r: (r,) + zero)],
            out_specs=pl.BlockSpec(out_block, lambda r: (r,) + zero),
        ),
        compiler_params=pltpu.CompilerParams(
            dimension_semantics=("parallel",),   # shard row tiles across TCs
            vmem_limit_bytes=vmem_limit,
        ),
        cost_estimate=pl.CostEstimate(
            flops=0, transcendentals=0, bytes_accessed=in_bytes + out_bytes),
    )(x_work)

    # Un-fold the merged dims back to the true output shape (free view).
    return out.reshape((N, C) + out_spatial_true)


def _reference_trim(x, size, side='both'):
    """Pure-JAX reference replicating Trim.forward's slicing."""
    n_spatial = x.ndim - 2
    sides = to_list(side, n_spatial)
    sizes = to_list(size, n_spatial)
    slc = [slice(None)] * x.ndim
    for i, (sd, sz) in enumerate(zip(sides, sizes)):
        idx = 2 + i
        if sd is None or sz < 1:
            continue
        elif sd == 'front':
            slc[idx] = slice(sz, x.shape[idx])
        elif sd == 'both':
            slc[idx] = slice(sz // 2, -math.ceil(sz / 2))
        elif sd == 'end':
            slc[idx] = slice(0, -sz)
        else:
            raise ValueError(f'trim side {sd} unknown')
    return x[tuple(slc)]


if __name__ == "__main__":
    key = jax.random.PRNGKey(0)
    ks = jax.random.split(key, 6)

    # --- small NCHW input: fallback path AND forced-Pallas path ---
    x = jax.random.normal(ks[0], (2, 4, 16, 16), dtype=jnp.float32)
    cases = [
        dict(size=4, side='both'),                 # trim H and W
        dict(size=[3, 5], side=['front', 'end']),  # per-dim sides
        dict(size=[4, 0], side=['both', None]),    # trailing-fold (lane-dense)
        dict(size=[0, 5], side=[None, 'end']),     # leading-fold path
    ]
    for c in cases:
        ref = _reference_trim(x, **c)
        out_fb = trim_forward(x, **c)                      # tiny -> XLA fallback
        out_pl = trim_forward(x, **c, force_pallas=True)   # Pallas path
        jax.block_until_ready((out_fb, out_pl))
        np.testing.assert_array_equal(np.asarray(out_fb), np.asarray(ref))
        np.testing.assert_array_equal(np.asarray(out_pl), np.asarray(ref))

    # bf16 forced-Pallas case
    xb = x.astype(jnp.bfloat16)
    outb = trim_forward(xb, size=4, side='both', force_pallas=True)
    jax.block_until_ready(outb)
    np.testing.assert_array_equal(
        np.asarray(outb, dtype=np.float32),
        np.asarray(_reference_trim(xb, 4, 'both'), dtype=np.float32))

    # --- NCT (1-D conv) inputs ---
    xt = jax.random.normal(ks[1], (2, 4, 16), dtype=jnp.float32)
    out4 = trim_forward(xt, size=0, side='both')           # identity short-circuit
    np.testing.assert_array_equal(np.asarray(out4), np.asarray(xt))
    out5 = trim_forward(xt, size=5, side='end', force_pallas=True)
    jax.block_until_ready(out5)
    np.testing.assert_array_equal(
        np.asarray(out5), np.asarray(_reference_trim(xt, 5, 'end')))
    assert out5.shape == (2, 4, 11), out5.shape

    # ragged row-tile grid, m == 1 (sublane-aligned bR, partial last block)
    xt2 = jax.random.normal(ks[2], (3, 5, 2048), dtype=jnp.float32)
    out6 = trim_forward(xt2, size=9, side='both',
                        force_pallas=True, block_bytes=16 << 10)
    jax.block_until_ready(out6)
    np.testing.assert_array_equal(
        np.asarray(out6), np.asarray(_reference_trim(xt2, 9, 'both')))

    # ragged row-tile grid, m == 2
    x2 = jax.random.normal(ks[3], (3, 5, 16, 256), dtype=jnp.float32)
    out7 = trim_forward(x2, size=[2, 6], side=['both', 'both'],
                        force_pallas=True, block_bytes=32 << 10)
    jax.block_until_ready(out7)
    np.testing.assert_array_equal(
        np.asarray(out7), np.asarray(_reference_trim(x2, [2, 6], ['both', 'both'])))

    # moderate input: automatically takes the Pallas path (default + tiled grid)
    x3 = jax.random.normal(ks[4], (2, 8, 48, 640), dtype=jnp.float32)
    ref3 = _reference_trim(x3, size=[4, 6], side=['both', 'end'])
    out3a = trim_forward(x3, size=[4, 6], side=['both', 'end'])
    out3b = trim_forward(x3, size=[4, 6], side=['both', 'end'],
                         block_bytes=128 << 10)
    jax.block_until_ready((out3a, out3b))
    np.testing.assert_array_equal(np.asarray(out3a), np.asarray(ref3))
    np.testing.assert_array_equal(np.asarray(out3b), np.asarray(ref3))
    assert out3a.shape == (2, 8, 44, 634), out3a.shape

    print("KERNEL_OK")
</pallas_src>

<mosaic_0001>
module attributes {stable_mosaic.version = 11 : i64} {
  func.func @trim_kernel(%arg0: i32, %arg1: memref<8x16x16xf32, #tpu.memory_space<vmem>>, %arg2: memref<8x12x12xf32, #tpu.memory_space<vmem>>) attributes {dimension_semantics = [#tpu.dimension_semantics<parallel>], iteration_bounds = array<i64: 1>, scalar_prefetch = 0 : i64, scratch_operands = 0 : i64, tpu.core_type = #tpu.core_type<tc>, window_params = [{transform_indices = @transform_0, window_bounds = array<i64: 8, 16, 16>}, {transform_indices = @transform_1, window_bounds = array<i64: 8, 12, 12>}]} {
    %c0 = arith.constant 0 : index
    %c2 = arith.constant 2 : index
    %c2_0 = arith.constant 2 : index
    %0 = vector.load %arg1[%c0, %c2, %c2_0] : memref<8x16x16xf32, #tpu.memory_space<vmem>>, vector<8x12x12xf32>
    %c0_1 = arith.constant 0 : index
    %c0_2 = arith.constant 0 : index
    %c0_3 = arith.constant 0 : index
    %1 = vector.load %arg2[%c0_1, %c0_2, %c0_3] : memref<8x12x12xf32, #tpu.memory_space<vmem>>, vector<8x12x12xf32>
    tpu.vector_store %arg2[%c0_1, %c0_2, %c0_3], %0 {strides = array<i32>} : memref<8x12x12xf32, #tpu.memory_space<vmem>>, vector<8x12x12xf32>,
    return
  }
  func.func @transform_0(%arg0: i32) -> (i32, i32, i32) {
    %c0_i32 = arith.constant 0 : i32
    %c0_i32_0 = arith.constant 0 : i32
    %c0_i32_1 = arith.constant 0 : i32
    return %arg0, %c0_i32, %c0_i32_0 : i32, i32, i32
  }
  func.func @transform_1(%arg0: i32) -> (i32, i32, i32) {
    %c0_i32 = arith.constant 0 : i32
    %c0_i32_0 = arith.constant 0 : i32
    %c0_i32_1 = arith.constant 0 : i32
    return %arg0, %c0_i32, %c0_i32_0 : i32, i32, i32
  }
}

</mosaic_0001>

<bundles_post_ra>
// kernel: tpu_custom_call.1
= control target key start
LH: loop header
LB: loop body
LE: loop exit
PB: predicated region body
PF: predicated region fallthrough
CT: control target
= control target key end

     0   :  { %6 = vsyncpa [#allocation3], 0  ;;  %s151_s6 = smov [#allocation2]   ;;  %s232_s0 = inlined_call_operand.hbm [shape: f32[8,16,16], index: 0, kind: input, shape index: {}]   ;;  %s233_s1 = inlined_call_operand.vmem [shape: f32[8,12,12], index: 1, kind: output, shape index: {}]  }
   0x1   :  { %s12_s7 = sshll.u32 %s151_s6, 4  ;;  %s13_s7 = int_to_ptr.vmem [resolvable:$true] %s12_s7 }
   0x2   :  { %s137_s8 = scalar_lea.vmem %s13_s7, 2048  ;;  %p142_p1 = scmp.lt.s32.totalorder %s13_s7, %s13_s7 }
   0x3   :  { %p138_p0 = scmp.ne.s32.totalorder %s13_s7, %s137_s8  ;;  %p143_p2 = scmp.lt.s32.totalorder %s137_s8, %s137_s8 }
   0x5   :  { %p144_p3 = por %p143_p2, %p142_p1 }
   0x7   :  { %p145_p4 = pnand %p144_p3, %p138_p0 }
   0x9   :  { %148 = shalt.err (!%p145_p4)
}
   0xa   :  { %s152_s9 = smov 128   ;;  %s153_s10 = smov 8  }
   0xb   :  { %18 = dma.hbm_to_vmem [thread:$0]  %s232_s0, 2048, %s13_s7, [#allocation3], %s152_s9, %s152_s9, %s153_s10  }
   0xc   :  { %149 = dma.done.wait [#allocation3], 2048  }
   0xd   :  { %150 = vsyncadd [#allocation3], 4294965248  ;;  %v24_v0 = vld [vmem:[#allocation2 + $0x12] sm:$0xff]  ;;  %v22_v1 = vld [vmem:[#allocation2 + $0x2] sm:$0xff]  ;;  %s154_s13 = smov 126   ;;  %vm102_vm0 = vcmask 97280  }
   0xe   :  { %58 = vrot.lane.b32.xlu1 %v24_v0, %s154_s13  ;;  %54 = vrot.lane.b32.xlu0 %v22_v1, %s154_s13  ;;  %v25_v2 = vld [vmem:[#allocation2 + $0x1a] sm:$0xf]  ;;  %v23_v3 = vld [vmem:[#allocation2 + $0xa] sm:$0xf]  ;;  %v26_v5 = vld [vmem:[#allocation2 + $0x22] sm:$0xff]  ;;  %vm104_vm1 = vcmask 93184  }
   0xf   :  { %v27_v4 = vld [vmem:[#allocation2 + $0x2a] sm:$0xf]  ;;  %v29_v6 = vld [vmem:[#allocation2 + $0x3a] sm:$0xf]  ;;  %v28_v7 = vld [vmem:[#allocation2 + $0x32] sm:$0xff] }
  0x10   :  { %v31_v8 = vld [vmem:[#allocation2 + $0x4a] sm:$0xf]  ;;  %v30_v9 = vld [vmem:[#allocation2 + $0x42] sm:$0xff]  ;;  %v33_v10 = vld [vmem:[#allocation2 + $0x5a] sm:$0xf] }
  0x11   :  { %v32_v11 = vld [vmem:[#allocation2 + $0x52] sm:$0xff]  ;;  %v35_v12 = vld [vmem:[#allocation2 + $0x6a] sm:$0xf]  ;;  %v34_v13 = vld [vmem:[#allocation2 + $0x62] sm:$0xff] }
  0x12   :  { %60 = vrot.lane.b32.xlu1 %v25_v2, %s154_s13  ;;  %56 = vrot.lane.b32.xlu0 %v23_v3, %s154_s13  ;;  %v37_v14 = vld [vmem:[#allocation2 + $0x7a] sm:$0xf]  ;;  %v36_v15 = vld [vmem:[#allocation2 + $0x72] sm:$0xff] }
  0x16   :  { %64 = vrot.lane.b32.xlu1 %v27_v4, %s154_s13  ;;  %62 = vrot.lane.b32.xlu0 %v26_v5, %s154_s13 }
  0x1a   :  { %68 = vrot.lane.b32.xlu1 %v29_v6, %s154_s13  ;;  %66 = vrot.lane.b32.xlu0 %v28_v7, %s154_s13 }
  0x1e   :  { %72 = vrot.lane.b32.xlu1 %v31_v8, %s154_s13  ;;  %70 = vrot.lane.b32.xlu0 %v30_v9, %s154_s13 }
  0x22   :  { %76 = vrot.lane.b32.xlu1 %v33_v10, %s154_s13  ;;  %74 = vrot.lane.b32.xlu0 %v32_v11, %s154_s13 }
  0x26   :  { %80 = vrot.lane.b32.xlu1 %v35_v12, %s154_s13  ;;  %78 = vrot.lane.b32.xlu0 %v34_v13, %s154_s13 }
  0x2a   :  { %84 = vrot.lane.b32.xlu1 %v37_v14, %s154_s13  ;;  %82 = vrot.lane.b32.xlu0 %v36_v15, %s154_s13 }
  0x80   :  { %v59_v16 = vpop.permute.xlu1 %58  ;;  %v55_v17 = vpop.permute.xlu0 %54 }
  0x81   :  { %106 = vst.msk [vmem:[%s233_s1 + $0x10] sm:$0xff] %vm102_vm0, %v59_v16  ;;  %103 = vst.msk [vmem:[%s233_s1] sm:$0xff] %vm102_vm0, %v55_v17 }
  0x84   :  { %v61_v18 = vpop.permute.xlu1 %60  ;;  %v57_v19 = vpop.permute.xlu0 %56 }
  0x85   :  { %107 = vst.msk [vmem:[%s233_s1 + $0x18] sm:$0xf] %vm104_vm1, %v61_v18  ;;  %105 = vst.msk [vmem:[%s233_s1 + $0x8] sm:$0xf] %vm104_vm1, %v57_v19 }
  0x88   :  { %v65_v20 = vpop.permute.xlu1 %64  ;;  %v63_v21 = vpop.permute.xlu0 %62 }
  0x89   :  { %109 = vst.msk [vmem:[%s233_s1 + $0x28] sm:$0xf] %vm104_vm1, %v65_v20 }
  0x8a   :  { %108 = vst.msk [vmem:[%s233_s1 + $0x20] sm:$0xff] %vm102_vm0, %v63_v21 }
  0x8c   :  { %v69_v22 = vpop.permute.xlu1 %68  ;;  %v67_v23 = vpop.permute.xlu0 %66 }
  0x8d   :  { %111 = vst.msk [vmem:[%s233_s1 + $0x38] sm:$0xf] %vm104_vm1, %v69_v22 }
  0x8e   :  { %110 = vst.msk [vmem:[%s233_s1 + $0x30] sm:$0xff] %vm102_vm0, %v67_v23 }
  0x90   :  { %v73_v24 = vpop.permute.xlu1 %72  ;;  %v71_v25 = vpop.permute.xlu0 %70 }
  0x91   :  { %113 = vst.msk [vmem:[%s233_s1 + $0x48] sm:$0xf] %vm104_vm1, %v73_v24 }
  0x92   :  { %112 = vst.msk [vmem:[%s233_s1 + $0x40] sm:$0xff] %vm102_vm0, %v71_v25 }
  0x94   :  { %v77_v26 = vpop.permute.xlu1 %76  ;;  %v75_v27 = vpop.permute.xlu0 %74 }
  0x95   :  { %115 = vst.msk [vmem:[%s233_s1 + $0x58] sm:$0xf] %vm104_vm1, %v77_v26 }
  0x96   :  { %114 = vst.msk [vmem:[%s233_s1 + $0x50] sm:$0xff] %vm102_vm0, %v75_v27 }
  0x98   :  { %v81_v28 = vpop.permute.xlu1 %80  ;;  %v79_v29 = vpop.permute.xlu0 %78 }
  0x99   :  { %117 = vst.msk [vmem:[%s233_s1 + $0x68] sm:$0xf] %vm104_vm1, %v81_v28 }
  0x9a   :  { %116 = vst.msk [vmem:[%s233_s1 + $0x60] sm:$0xff] %vm102_vm0, %v79_v29 }
  0x9c   :  { %v85_v30 = vpop.permute.xlu1 %84  ;;  %v83_v31 = vpop.permute.xlu0 %82 }
  0x9d   :  { %119 = vst.msk [vmem:[%s233_s1 + $0x78] sm:$0xf] %vm104_vm1, %v85_v30 }
  0x9e   :  { %118 = vst.msk [vmem:[%s233_s1 + $0x70] sm:$0xff] %vm102_vm0, %v83_v31 }
  0x9f   :  { %124 = vsyncpa [#allocation3], 1 }

</bundles_post_ra>
